<compile_context>
chip_gen: v7x
topology: tpu7x:2x2x1
jax: 0.10.0
libtpu: 0.0.40
codegen_flags: <defaults>
</compile_context>

<pallas_src>
import functools

import jax
import jax.numpy as jnp
from jax.experimental import pallas as pl
from jax.experimental.pallas import tpu as pltpu


HIDDEN_PAD = 128   # padded hidden width  (one clean MXU tile, no masked lanes)
HEAD_PAD = 128     # lane-dense fused head width: [ mu | logvar | zero pad ]


def encoder_kernel(x_ref, w1_ref, b1_ref, wh_ref, bh_ref, out_ref, *, latent_dim):
    """One batch tile.

    x_ref  : [TB, D]          f32 (straight from HBM)
    w1_ref : [D,  HIDDEN_PAD] compute dtype (bf16 or f32)   -- VMEM resident
    b1_ref : [1,  HIDDEN_PAD] f32                           -- VMEM resident
    wh_ref : [HIDDEN_PAD, HEAD_PAD] f32 (mu|logvar fused)   -- VMEM resident
    bh_ref : [1,  HEAD_PAD]   f32                           -- VMEM resident
    out_ref: [TB, HEAD_PAD]   f32; lanes [0,L)=mu, [L,2L)=sigma, rest junk(=1)
    """
    # Cast to the MXU operand dtype here (no separate XLA convert op on x).
    x = x_ref[...].astype(w1_ref.dtype)

    # Hidden layer on the MXU with f32 accumulation; f32 epilogue on the VPU.
    h = jnp.dot(x, w1_ref[...], preferred_element_type=jnp.float32)
    h = jnp.maximum(h + b1_ref[...], 0.0)                       # [TB, 128] f32

    # Fused mu/logvar head in f32 (negligible FLOPs; bf16 would inject error
    # into logvar that exp(0.5*logvar) amplifies).
    heads = jnp.dot(h, wh_ref[...],
                    preferred_element_type=jnp.float32) + bh_ref[...]

    # lanes [0, L) = mu (identity); lanes [L, 128) = exp(0.5 * value).
    # Zero-padded lanes become exp(0) = 1 and are sliced away in the wrapper.
    lane = jax.lax.broadcasted_iota(jnp.int32, heads.shape, dimension=1)
    out_ref[...] = jnp.where(lane < latent_dim, heads, jnp.exp(0.5 * heads))


def prepare_encoder_params(w1, b1, wmu, bmu, wlv, blv,
                           compute_dtype=jnp.bfloat16):
    """Layout prep done ONCE at init time (not in the per-step forward).

    PyTorch convention in:  w* is [out, in], b* is [out].
    Kernel layout out:
        w1_t    [D, HIDDEN_PAD]          (compute dtype, zero-padded columns)
        b1_p    [1, HIDDEN_PAD]          (f32, zero-padded)
        w_heads [HIDDEN_PAD, HEAD_PAD]   (f32: [Wmu^T | Wlv^T | 0])
        b_heads [1, HEAD_PAD]            (f32: [bmu   | blv   | 0])
    """
    w1 = jnp.asarray(w1, jnp.float32)      # [H, D]
    b1 = jnp.asarray(b1, jnp.float32)      # [H]
    wmu = jnp.asarray(wmu, jnp.float32)    # [L, H]
    bmu = jnp.asarray(bmu, jnp.float32)    # [L]
    wlv = jnp.asarray(wlv, jnp.float32)    # [L, H]
    blv = jnp.asarray(blv, jnp.float32)    # [L]

    H, D = w1.shape
    L = wmu.shape[0]
    assert H <= HIDDEN_PAD and 2 * L <= HEAD_PAD

    w1_t = jnp.zeros((D, HIDDEN_PAD), jnp.float32).at[:, :H].set(w1.T)
    w1_t = w1_t.astype(compute_dtype)
    b1_p = jnp.zeros((1, HIDDEN_PAD), jnp.float32).at[0, :H].set(b1)

    w_heads = jnp.zeros((HIDDEN_PAD, HEAD_PAD), jnp.float32)
    w_heads = w_heads.at[:H, :L].set(wmu.T).at[:H, L:2 * L].set(wlv.T)
    b_heads = jnp.zeros((1, HEAD_PAD), jnp.float32)
    b_heads = b_heads.at[0, :L].set(bmu).at[0, L:2 * L].set(blv)

    return w1_t, b1_p, w_heads, b_heads


def _num_tensorcores():
    """2 on v7x (megacore-style), 1 on v5e/v6e."""
    try:
        kind = jax.devices()[0].device_kind.lower()
    except Exception:  # pragma: no cover - defensive
        return 1
    return 2 if "v7" in kind else 1


def _pick_batch_tile(B, block_b, num_cores):
    if B <= block_b:
        return B                      # whole batch = one grid step
    tb = max(8, (block_b // 8) * 8)
    if num_cores >= 2:
        # Prefer an even number of grid steps so the "parallel" batch axis
        # actually lands work on both v7x TensorCores.
        steps = -(-B // tb)
        if steps % 2:
            steps += 1
            tb = max(8, ((-(-B // steps)) + 7) // 8 * 8)
    return tb


@functools.partial(jax.jit, static_argnames=("latent_dim", "block_b"))
def encoder_forward(x, w1_t, b1_p, w_heads, b_heads, *, latent_dim,
                    block_b=1024):
    """x: [B, D] float32. Returns (mu, sigma), each [B, latent_dim] float32."""
    B, D = x.shape
    Hp = w1_t.shape[1]
    Lp = w_heads.shape[1]

    tb = _pick_batch_tile(B, block_b, _num_tensorcores())
    grid = (pl.cdiv(B, tb),)

    # VMEM budget: double-buffered f32 x tile + f32 lane-dense output tile
    # + resident weights/biases.  Cap <= 32 MiB (safe on v7x's 64 MiB VMEM).
    w_item = jnp.dtype(w1_t.dtype).itemsize
    vmem_bytes = (2 * tb * D * 4            # x tiles (f32, double-buffered)
                  + 2 * tb * Lp * 4         # output tiles (f32)
                  + D * Hp * w_item         # w1 (resident)
                  + Hp * Lp * 4             # fused head weights (resident)
                  + (Hp + Lp) * 4)          # biases
    vmem_limit = int(min(max(2 * vmem_bytes, 16 << 20), 32 << 20))

    kernel = functools.partial(encoder_kernel, latent_dim=latent_dim)

    grid_spec = pltpu.PrefetchScalarGridSpec(
        num_scalar_prefetch=0,
        grid=grid,
        in_specs=[
            pl.BlockSpec((tb, D), lambda i: (i, 0)),     # x: batch tiled (f32)
            pl.BlockSpec((D, Hp), lambda i: (0, 0)),     # w1: VMEM resident
            pl.BlockSpec((1, Hp), lambda i: (0, 0)),     # b1: VMEM resident
            pl.BlockSpec((Hp, Lp), lambda i: (0, 0)),    # fused head W
            pl.BlockSpec((1, Lp), lambda i: (0, 0)),     # fused head b
        ],
        out_specs=pl.BlockSpec((tb, Lp), lambda i: (i, 0)),
    )

    fused = pl.pallas_call(
        kernel,
        out_shape=jax.ShapeDtypeStruct((B, Lp), jnp.float32),
        grid_spec=grid_spec,
        compiler_params=pltpu.CompilerParams(
            dimension_semantics=("parallel",),
            vmem_limit_bytes=vmem_limit,
        ),
    )(x, w1_t, b1_p, w_heads, b_heads)

    return fused[:, :latent_dim], fused[:, latent_dim:2 * latent_dim]


def reference_forward(x, w1, b1, wmu, bmu, wlv, blv):
    h = jnp.maximum(x @ w1.T + b1, 0.0)
    mu = h @ wmu.T + bmu
    logvar = h @ wlv.T + blv
    return mu, jnp.exp(0.5 * logvar)


if __name__ == "__main__":
    # Small shapes consistent with the module: SIZE=16 -> input_dim = 16*16*3,
    # hidden_dim=50, latent_dim=10, batch=64 (single grid step).
    B = 64
    size = 16
    input_dim = size * size * 3     # 768
    hidden_dim = 50
    latent_dim = 10

    key = jax.random.PRNGKey(0)
    kx, k1, k2, k3, k4, k5, k6 = jax.random.split(key, 7)
    x = jax.random.normal(kx, (B, input_dim), dtype=jnp.float32)

    # Deterministic PyTorch-Linear-style init (uniform, fan-in scaled).
    def init_linear(kw, kb, out_dim, in_dim):
        bound = 1.0 / (in_dim ** 0.5)
        w = jax.random.uniform(kw, (out_dim, in_dim), jnp.float32, -bound, bound)
        b = jax.random.uniform(kb, (out_dim,), jnp.float32, -bound, bound)
        return w, b

    w1, b1 = init_linear(k1, k2, hidden_dim, input_dim)
    wmu, bmu = init_linear(k3, k4, latent_dim, hidden_dim)
    wlv, blv = init_linear(k5, k6, latent_dim, hidden_dim)

    mu_ref, sigma_ref = reference_forward(x, w1, b1, wmu, bmu, wlv, blv)

    # bf16 MXU operands for the big matmul, f32 accumulate + f32 head/epilogue.
    params_bf16 = prepare_encoder_params(w1, b1, wmu, bmu, wlv, blv,
                                         compute_dtype=jnp.bfloat16)
    mu, sigma = encoder_forward(x, *params_bf16, latent_dim=latent_dim)
    jax.block_until_ready((mu, sigma))
    assert mu.shape == (B, latent_dim) and sigma.shape == (B, latent_dim)
    assert jnp.allclose(mu, mu_ref, atol=2e-2, rtol=2e-2)
    assert jnp.allclose(sigma, sigma_ref, atol=2e-2, rtol=2e-2)

    # f32-operand path (tight-precision check of the fused-kernel math).
    params_f32 = prepare_encoder_params(w1, b1, wmu, bmu, wlv, blv,
                                        compute_dtype=jnp.float32)
    mu32, sigma32 = encoder_forward(x, *params_f32, latent_dim=latent_dim)
    jax.block_until_ready((mu32, sigma32))
    assert jnp.allclose(mu32, mu_ref, atol=1e-3, rtol=1e-3)
    assert jnp.allclose(sigma32, sigma_ref, atol=1e-3, rtol=1e-3)

    print("KERNEL_OK")
</pallas_src>

<mosaic_0001>
module attributes {stable_mosaic.version = 11 : i64} {
  func.func @encoder_kernel(%arg0: i32, %arg1: memref<64x768xf32, #tpu.memory_space<vmem>>, %arg2: memref<768x128xbf16, #tpu.memory_space<vmem>>, %arg3: memref<1x128xf32, #tpu.memory_space<vmem>>, %arg4: memref<128x128xf32, #tpu.memory_space<vmem>>, %arg5: memref<1x128xf32, #tpu.memory_space<vmem>>, %arg6: memref<64x128xf32, #tpu.memory_space<vmem>>) attributes {dimension_semantics = [#tpu.dimension_semantics<parallel>], iteration_bounds = array<i64: 1>, scalar_prefetch = 0 : i64, scratch_operands = 0 : i64, tpu.core_type = #tpu.core_type<tc>, window_params = [{transform_indices = @transform_0, window_bounds = array<i64: 64, 768>}, {pipeline_mode = #tpu.pipeline_mode<synchronous>, transform_indices = @transform_1, window_bounds = array<i64: 768, 128>}, {pipeline_mode = #tpu.pipeline_mode<synchronous>, transform_indices = @transform_2, window_bounds = array<i64: 1, 128>}, {pipeline_mode = #tpu.pipeline_mode<synchronous>, transform_indices = @transform_3, window_bounds = array<i64: 128, 128>}, {pipeline_mode = #tpu.pipeline_mode<synchronous>, transform_indices = @transform_4, window_bounds = array<i64: 1, 128>}, {transform_indices = @transform_5, window_bounds = array<i64: 64, 128>}]} {
    %c0 = arith.constant 0 : index
    %c0_0 = arith.constant 0 : index
    %0 = vector.load %arg1[%c0, %c0_0] : memref<64x768xf32, #tpu.memory_space<vmem>>, vector<64x768xf32>
    %1 = arith.truncf %0 : vector<64x768xf32> to vector<64x768xbf16>
    %c0_1 = arith.constant 0 : index
    %c0_2 = arith.constant 0 : index
    %2 = vector.load %arg2[%c0_1, %c0_2] : memref<768x128xbf16, #tpu.memory_space<vmem>>, vector<768x128xbf16>
    %cst = arith.constant dense<0.000000e+00> : vector<64x128xf32>
    %3 = tpu.matmul %1, %2, %cst {dimension_numbers = #tpu.dot_dimension_numbers<[1], [0], [0], [1], [0, 0, 1, 1], [], []>} : vector<64x768xbf16>, vector<768x128xbf16>, vector<64x128xf32> -> vector<64x128xf32>
    %c0_3 = arith.constant 0 : index
    %c0_4 = arith.constant 0 : index
    %4 = vector.load %arg3[%c0_3, %c0_4] : memref<1x128xf32, #tpu.memory_space<vmem>>, vector<1x128xf32>
    %5 = vector.broadcast %4 : vector<1x128xf32> to vector<64x128xf32>
    %6 = arith.addf %3, %5 : vector<64x128xf32>
    %cst_5 = arith.constant 0.000000e+00 : f32
    %7 = vector.broadcast %cst_5 : f32 to vector<64x128xf32>
    %8 = arith.maximumf %6, %7 : vector<64x128xf32>
    %c0_6 = arith.constant 0 : index
    %c0_7 = arith.constant 0 : index
    %9 = vector.load %arg4[%c0_6, %c0_7] : memref<128x128xf32, #tpu.memory_space<vmem>>, vector<128x128xf32>
    %cst_8 = arith.constant dense<0.000000e+00> : vector<64x128xf32>
    %10 = tpu.matmul %8, %9, %cst_8 {dimension_numbers = #tpu.dot_dimension_numbers<[1], [0], [0], [1], [0, 0, 1, 1], [], []>} : vector<64x128xf32>, vector<128x128xf32>, vector<64x128xf32> -> vector<64x128xf32>
    %c0_9 = arith.constant 0 : index
    %c0_10 = arith.constant 0 : index
    %11 = vector.load %arg5[%c0_9, %c0_10] : memref<1x128xf32, #tpu.memory_space<vmem>>, vector<1x128xf32>
    %12 = vector.broadcast %11 : vector<1x128xf32> to vector<64x128xf32>
    %13 = arith.addf %10, %12 : vector<64x128xf32>
    %14 = tpu.iota {dimensions = array<i32: 1>} : vector<64x128xi32>
    %c10_i32 = arith.constant 10 : i32
    %15 = vector.broadcast %c10_i32 : i32 to vector<64x128xi32>
    %16 = arith.cmpi slt, %14, %15 : vector<64x128xi32>
    %cst_11 = arith.constant 5.000000e-01 : f32
    %17 = vector.broadcast %cst_11 : f32 to vector<64x128xf32>
    %18 = arith.mulf %17, %13 : vector<64x128xf32>
    %19 = math.exp %18 : vector<64x128xf32>
    %20 = arith.select %16, %13, %19 : vector<64x128xi1>, vector<64x128xf32>
    %c0_12 = arith.constant 0 : index
    %c0_13 = arith.constant 0 : index
    %21 = vector.load %arg6[%c0_12, %c0_13] : memref<64x128xf32, #tpu.memory_space<vmem>>, vector<64x128xf32>
    tpu.vector_store %arg6[%c0_12, %c0_13], %20 {strides = array<i32>} : memref<64x128xf32, #tpu.memory_space<vmem>>, vector<64x128xf32>,
    return
  }
  func.func @transform_0(%arg0: i32) -> (i32, i32) {
    %c0_i32 = arith.constant 0 : i32
    %c0_i32_0 = arith.constant 0 : i32
    return %arg0, %c0_i32 : i32, i32
  }
  func.func @transform_1(%arg0: i32) -> (i32, i32) {
    %c0_i32 = arith.constant 0 : i32
    %c0_i32_0 = arith.constant 0 : i32
    %c0_i32_1 = arith.constant 0 : i32
    return %c0_i32, %c0_i32_0 : i32, i32
  }
  func.func @transform_2(%arg0: i32) -> (i32, i32) {
    %c0_i32 = arith.constant 0 : i32
    %c0_i32_0 = arith.constant 0 : i32
    %c0_i32_1 = arith.constant 0 : i32
    return %c0_i32, %c0_i32_0 : i32, i32
  }
  func.func @transform_3(%arg0: i32) -> (i32, i32) {
    %c0_i32 = arith.constant 0 : i32
    %c0_i32_0 = arith.constant 0 : i32
    %c0_i32_1 = arith.constant 0 : i32
    return %c0_i32, %c0_i32_0 : i32, i32
  }
  func.func @transform_4(%arg0: i32) -> (i32, i32) {
    %c0_i32 = arith.constant 0 : i32
    %c0_i32_0 = arith.constant 0 : i32
    %c0_i32_1 = arith.constant 0 : i32
    return %c0_i32, %c0_i32_0 : i32, i32
  }
  func.func @transform_5(%arg0: i32) -> (i32, i32) {
    %c0_i32 = arith.constant 0 : i32
    %c0_i32_0 = arith.constant 0 : i32
    return %arg0, %c0_i32 : i32, i32
  }
}

</mosaic_0001>

<bundles_post_ra>
// kernel: encoder_forward.1
= control target key start
LH: loop header
LB: loop body
LE: loop exit
PB: predicated region body
PF: predicated region fallthrough
CT: control target
= control target key end

     0   :  { %10 = vsyncpa [#allocation3], 0  ;;  %s1431_s0 = inlined_call_operand.hbm [shape: f32[64,768], index: 0, kind: input, shape index: {}]   ;;  %s1432_s1 = inlined_call_operand.hbm [shape: bf16[768,128], index: 1, kind: input, shape index: {}]   ;;  %s1433_s2 = inlined_call_operand.vmem [shape: f32[1,128], index: 2, kind: input, shape index: {}]   ;;  %s1434_s3 = inlined_call_operand.hbm [shape: f32[128,128], index: 3, kind: input, shape index: {}]   ;;  %s1435_s4 = inlined_call_operand.vmem [shape: f32[1,128], index: 4, kind: input, shape index: {}]   ;;  %s1436_s5 = inlined_call_operand.vmem [shape: f32[64,128], index: 5, kind: output, shape index: {}]  }
   0x1   :  { %11 = vsyncpa [#allocation5], 0  ;;  %s1318_s18 = smov [#allocation4]   ;;  %s1248_s22 = scalar_lea.hbm %s1432_s1, 6144 }
   0x2   :  { %s29_s19 = sshll.u32 %s1318_s18, 4  ;;  %p1249_p0 = scmp.ne.s32.totalorder %s1432_s1, %s1248_s22  ;;  %s30_s19 = int_to_ptr.vmem [resolvable:$true] %s29_s19 }
   0x3   :  { %p1252_p1 = scmp.lt.u32.totalorder %s1248_s22, %s1432_s1 }
   0x5   :  { %p1254_p2 = pnand %p1252_p1, %p1249_p0 }
   0x7   :  { %1257 = shalt.err (!%p1254_p2)
}
   0x8   :  { %s1258_s27 = scalar_lea.vmem %s30_s19, 6144  ;;  %p1263_p4 = scmp.lt.s32.totalorder %s30_s19, %s30_s19 }
   0x9   :  { %p1259_p3 = scmp.ne.s32.totalorder %s30_s19, %s1258_s27  ;;  %p1264_p5 = scmp.lt.s32.totalorder %s1258_s27, %s1258_s27 }
   0xb   :  { %p1265_p6 = por %p1264_p5, %p1263_p4 }
   0xd   :  { %p1266_p7 = pnand %p1265_p6, %p1259_p3 }
   0xf   :  { %1269 = shalt.err (!%p1266_p7)
}
  0x10   :  { %s1319_s28 = smov 64   ;;  %s1320_s29 = smov 4  }
  0x11   :  { %35 = dma.hbm_to_vmem [thread:$0]  %s1432_s1, 6144, %s30_s19, [#allocation5], %s1319_s28, %s1319_s28, %s1320_s29  }
  0x12   :  { %s1321_s7 = smov [#allocation2]   ;;  %s1270_s11 = scalar_lea.hbm %s1431_s0, 6144 }
  0x13   :  { %s17_s8 = sshll.u32 %s1321_s7, 4  ;;  %p1271_p8 = scmp.ne.s32.totalorder %s1431_s0, %s1270_s11  ;;  %s18_s8 = int_to_ptr.vmem [resolvable:$true] %s17_s8 }
  0x14   :  { %p1274_p9 = scmp.lt.u32.totalorder %s1270_s11, %s1431_s0 }
  0x16   :  { %p1276_p10 = pnand %p1274_p9, %p1271_p8 }
  0x18   :  { %1279 = shalt.err (!%p1276_p10)
}
  0x19   :  { %s1280_s16 = scalar_lea.vmem %s18_s8, 6144  ;;  %p1285_p12 = scmp.lt.s32.totalorder %s18_s8, %s18_s8 }
  0x1a   :  { %p1281_p11 = scmp.ne.s32.totalorder %s18_s8, %s1280_s16  ;;  %p1286_p13 = scmp.lt.s32.totalorder %s1280_s16, %s1280_s16 }
  0x1c   :  { %p1287_p0 = por %p1286_p13, %p1285_p12 }
  0x1e   :  { %p1288_p1 = pnand %p1287_p0, %p1281_p11 }
  0x20   :  { %1291 = shalt.err (!%p1288_p1)
}
  0x21   :  { %s1322_s1 = smov 768   ;;  %s1323_s17 = smov 48  }
  0x22   :  { %23 = dma.hbm_to_vmem [thread:$0]  %s1431_s0, 6144, %s18_s8, [#allocation3], %s1322_s1, %s1322_s1, %s1323_s17  }
  0x23   :  { %s1324_s20 = smov [#allocation6]   ;;  %s1292_s24 = scalar_lea.hbm %s1434_s3, 2048 }
  0x24   :  { %s43_s21 = sshll.u32 %s1324_s20, 4  ;;  %p1293_p2 = scmp.ne.s32.totalorder %s1434_s3, %s1292_s24  ;;  %s44_s21 = int_to_ptr.vmem [resolvable:$true] %s43_s21 }
  0x25   :  { %p1296_p3 = scmp.lt.u32.totalorder %s1292_s24, %s1434_s3 }
  0x27   :  { %p1298_p4 = pnand %p1296_p3, %p1293_p2 }
  0x29   :  { %1301 = shalt.err (!%p1298_p4)
}
  0x2a   :  { %s1302_s29 = scalar_lea.vmem %s44_s21, 2048  ;;  %p1307_p6 = scmp.lt.s32.totalorder %s44_s21, %s44_s21 }
  0x2b   :  { %p1303_p5 = scmp.ne.s32.totalorder %s44_s21, %s1302_s29  ;;  %p1308_p7 = scmp.lt.s32.totalorder %s1302_s29, %s1302_s29 }
  0x2d   :  { %p1309_p8 = por %p1308_p7, %p1307_p6 }
  0x2f   :  { %p1310_p9 = pnand %p1309_p8, %p1303_p5 }
  0x31   :  { %1313 = shalt.err (!%p1310_p9)
}
  0x32   :  { %s1325_s0 = smov 128   ;;  %s1326_s30 = smov 8  }
  0x33   :  { %49 = dma.hbm_to_vmem [thread:$0]  %s1434_s3, 2048, %s44_s21, [#allocation5], %s1325_s0, %s1325_s0, %s1326_s30  }
  0x34   :  { %1314 = dma.done.wait [#allocation3], 6144  }
  0x35   :  { %1315 = vsyncadd [#allocation3], 4294961152 }
  0x36   :  { %1316 = dma.done.wait [#allocation5], 8192  }
  0x37   :  { %1317 = vsyncadd [#allocation5], 4294959104  ;;  %v1184_v0 = vld [vmem:[#allocation4 + $0x40] sm:$0xff]   ;;  %v1188_v4 = vld [vmem:[#allocation4 + $0x48] sm:$0xff]  }
  0x38   :  { %v1185_v1 = vld [vmem:[#allocation4] sm:$0xff]   ;;  %955 = vmatprep.subr.bf16.mxu0 %v1184_v0  ;;  %v1189_v5 = vld [vmem:[#allocation4 + $0x8] sm:$0xff]   ;;  %v1192_v8 = vld [vmem:[#allocation4 + $0x50] sm:$0xff]  }
  0x39   :  { %v1186_v2 = vld [vmem:[#allocation4 + $0xc0] sm:$0xff]   ;;  %956 = vmatpush3.bf16.msra.mxu0 %v1185_v1  ;;  %v1190_v6 = vld [vmem:[#allocation4 + $0xc8] sm:$0xff]   ;;  %v1193_v9 = vld [vmem:[#allocation4 + $0x10] sm:$0xff]  }
  0x3a   :  { %v1187_v3 = vld [vmem:[#allocation4 + $0x80] sm:$0xff]   ;;  %995 = vmatprep.subr.bf16.mxu1 %v1186_v2  ;;  %957 = vmatprep.subr.bf16.mxu0 %v1188_v4  ;;  %v1191_v7 = vld [vmem:[#allocation4 + $0x88] sm:$0xff]   ;;  %v1194_v10 = vld [vmem:[#allocation4 + $0xd0] sm:$0xff]  }
  0x3b   :  { %996 = vmatpush3.bf16.msra.mxu1 %v1187_v3  ;;  %v1195_v11 = vld [vmem:[#allocation4 + $0x90] sm:$0xff]   ;;  %v1196_v12 = vld [vmem:[#allocation4 + $0x58] sm:$0xff]   ;;  %v1200_v16 = vld [vmem:[#allocation4 + $0x60] sm:$0xff]  }
  0x3c   :  { %997 = vmatprep.subr.bf16.mxu1 %v1190_v6  ;;  %v1197_v13 = vld [vmem:[#allocation4 + $0x18] sm:$0xff]   ;;  %v1201_v17 = vld [vmem:[#allocation4 + $0x20] sm:$0xff]   ;;  %v1204_v20 = vld [vmem:[#allocation4 + $0x68] sm:$0xff]  }
  0x3d   :  { %958 = vmatpush3.bf16.msra.mxu0 %v1189_v5  ;;  %v1198_v14 = vld [vmem:[#allocation4 + $0xd8] sm:$0xff]   ;;  %v1202_v18 = vld [vmem:[#allocation4 + $0xe0] sm:$0xff]   ;;  %v1205_v21 = vld [vmem:[#allocation4 + $0x28] sm:$0xff]  }
  0x3e   :  { %959 = vmatprep.subr.bf16.mxu0 %v1192_v8  ;;  %v1199_v15 = vld [vmem:[#allocation4 + $0x98] sm:$0xff]   ;;  %v1203_v19 = vld [vmem:[#allocation4 + $0xa0] sm:$0xff]   ;;  %v1206_v22 = vld [vmem:[#allocation4 + $0xe8] sm:$0xff]  }
  0x3f   :  { %998 = vmatpush3.bf16.msra.mxu1 %v1191_v7  ;;  %v1207_v23 = vld [vmem:[#allocation4 + $0xa8] sm:$0xff]   ;;  %v1208_v24 = vld [vmem:[#allocation4 + $0x70] sm:$0xff]   ;;  %v1212_v28 = vld [vmem:[#allocation4 + $0x78] sm:$0xff]  }
  0x40   :  { %999 = vmatprep.subr.bf16.mxu1 %v1194_v10  ;;  %v1209_v25 = vld [vmem:[#allocation4 + $0x30] sm:$0xff]   ;;  %v1213_v29 = vld [vmem:[#allocation4 + $0x38] sm:$0xff]   ;;  %v63_v31 = vld [vmem:[#allocation2 + $0x8] sm:$0xff] }
  0x41   :  { %960 = vmatpush3.bf16.msra.mxu0 %v1193_v9  ;;  %v1210_v26 = vld [vmem:[#allocation4 + $0xf0] sm:$0xff]   ;;  %v1214_v30 = vld [vmem:[#allocation4 + $0xf8] sm:$0xff]   ;;  %v62_v35 = vld [vmem:[#allocation2] sm:$0xff] }
  0x42   :  { %961 = vmatprep.subr.bf16.mxu0 %v1196_v12  ;;  %v1211_v27 = vld [vmem:[#allocation4 + $0xb0] sm:$0xff]   ;;  %v69_v32 = vld [vmem:[#allocation2 + $0x38] sm:$0xff]  ;;  %v1216_v38 = vld [vmem:[#allocation4 + $0x140] sm:$0xff]  }
  0x43   :  { %1000 = vmatpush3.bf16.msra.mxu1 %v1195_v11  ;;  %v111_v33 = vpack.c.bf16 %v69_v32, %v63_v31  ;;  %v1215_v34 = vld [vmem:[#allocation4 + $0xb8] sm:$0xff]   ;;  %v68_v36 = vld [vmem:[#allocation2 + $0x30] sm:$0xff]  ;;  %v71_v40 = vld [vmem:[#allocation2 + $0x48] sm:$0xff] }
  0x44   :  { %1001 = vmatprep.subr.bf16.mxu1 %v1198_v14  ;;  %v110_v37 = vpack.c.bf16 %v68_v36, %v62_v35  ;;  %v65_v39 = vld [vmem:[#allocation2 + $0x18] sm:$0xff]  ;;  %v1217_v42 = vld [vmem:[#allocation4 + $0x100] sm:$0xff]   ;;  %v64_v43 = vld [vmem:[#allocation2 + $0x10] sm:$0xff] }
  0x45   :  { %962 = vmatpush3.bf16.msra.mxu0 %v1197_v13  ;;  %557 = vmatprep.mubr.bf16.mxu0 %v111_v33  ;;  %v113_v41 = vpack.c.bf16 %v71_v40, %v65_v39  ;;  %v70_v44 = vld [vmem:[#allocation2 + $0x40] sm:$0xff]  ;;  %v1218_v46 = vld [vmem:[#allocation4 + $0x148] sm:$0xff]   ;;  %v81_v49 = vld [vmem:[#allocation2 + $0x98] sm:$0xff] }
  0x46   :  { %963 = vmatprep.subr.bf16.mxu0 %v1200_v16  ;;  %v112_v45 = vpack.c.bf16 %v70_v44, %v64_v43  ;;  %v1219_v47 = vld [vmem:[#allocation4 + $0x108] sm:$0xff]   ;;  %v74_v50 = vld [vmem:[#allocation2 + $0x60] sm:$0xff]  ;;  %v80_v51 = vld [vmem:[#allocation2 + $0x90] sm:$0xff] }
  0x47   :  { %1002 = vmatpush3.bf16.msra.mxu1 %v1199_v15  ;;  %622 = vmatprep.mubr.bf16.mxu1 %v113_v41  ;;  %v75_v48 = vld [vmem:[#allocation2 + $0x68] sm:$0xff]  ;;  %v116_v53 = vpack.c.bf16 %v80_v51, %v74_v50  ;;  %v1220_v54 = vld [vmem:[#allocation4 + $0x150] sm:$0xff]   ;;  %v77_v55 = vld [vmem:[#allocation2 + $0x78] sm:$0xff] }
  0x48   :  { %1003 = vmatprep.subr.bf16.mxu1 %v1202_v18  ;;  %v117_v52 = vpack.c.bf16 %v81_v49, %v75_v48  ;;  %v83_v56 = vld [vmem:[#allocation2 + $0xa8] sm:$0xff]  ;;  %v1221_v58 = vld [vmem:[#allocation4 + $0x110] sm:$0xff]   ;;  %v82_v60 = vld [vmem:[#allocation2 + $0xa0] sm:$0xff] }
  0x49   :  { %964 = vmatpush3.bf16.msra.mxu0 %v1201_v17  ;;  %v119_v57 = vpack.c.bf16 %v83_v56, %v77_v55  ;;  %v76_v59 = vld [vmem:[#allocation2 + $0x70] sm:$0xff]  ;;  %v1222_v62 = vld [vmem:[#allocation4 + $0x158] sm:$0xff]   ;;  %v87_v0 = vld [vmem:[#allocation2 + $0xc8] sm:$0xff] }
  0x4a   :  { %965 = vmatprep.subr.bf16.mxu0 %v1204_v20  ;;  %v118_v61 = vpack.c.bf16 %v82_v60, %v76_v59  ;;  %v1223_v63 = vld [vmem:[#allocation4 + $0x118] sm:$0xff]   ;;  %v86_v3 = vld [vmem:[#allocation2 + $0xc0] sm:$0xff]  ;;  %v92_v4 = vld [vmem:[#allocation2 + $0xf0] sm:$0xff] }
  0x4b   :  { %1004 = vmatpush3.bf16.msra.mxu1 %v1203_v19  ;;  %v93_v1 = vld [vmem:[#allocation2 + $0xf8] sm:$0xff]  ;;  %v1224_v5 = vld [vmem:[#allocation4 + $0x160] sm:$0xff]   ;;  %v122_v7 = vpack.c.bf16 %v92_v4, %v86_v3  ;;  %v95_v8 = vld [vmem:[#allocation2 + $0x108] sm:$0xff] }
  0x4c   :  { %1005 = vmatprep.subr.bf16.mxu1 %v1206_v22  ;;  %v123_v2 = vpack.c.bf16 %v93_v1, %v87_v0  ;;  %v89_v6 = vld [vmem:[#allocation2 + $0xd8] sm:$0xff]  ;;  %v1225_v10 = vld [vmem:[#allocation4 + $0x120] sm:$0xff]   ;;  %v88_v11 = vld [vmem:[#allocation2 + $0xd0] sm:$0xff] }
  0x4d   :  { %966 = vmatpush3.bf16.msra.mxu0 %v1205_v21  ;;  %v125_v9 = vpack.c.bf16 %v95_v8, %v89_v6  ;;  %v94_v12 = vld [vmem:[#allocation2 + $0x100] sm:$0xff]  ;;  %v1226_v13 = vld [vmem:[#allocation4 + $0x168] sm:$0xff]   ;;  %v105_v17 = vld [vmem:[#allocation2 + $0x158] sm:$0xff] }
  0x4e   :  { %967 = vmatprep.subr.bf16.mxu0 %v1208_v24  ;;  %v124_v14 = vpack.c.bf16 %v94_v12, %v88_v11  ;;  %v1227_v15 = vld [vmem:[#allocation4 + $0x128] sm:$0xff]   ;;  %v98_v18 = vld [vmem:[#allocation2 + $0x120] sm:$0xff]  ;;  %v104_v20 = vld [vmem:[#allocation2 + $0x150] sm:$0xff] }
  0x4f   :  { %1006 = vmatpush3.bf16.msra.mxu1 %v1207_v23  ;;  %v99_v16 = vld [vmem:[#allocation2 + $0x128] sm:$0xff]  ;;  %v1228_v21 = vld [vmem:[#allocation4 + $0x170] sm:$0xff]   ;;  %v101_v22 = vld [vmem:[#allocation2 + $0x138] sm:$0xff] }
  0x50   :  { %1007 = vmatprep.subr.bf16.mxu1 %v1210_v26  ;;  %v129_v19 = vpack.c.bf16 %v105_v17, %v99_v16  ;;  %v107_v23 = vld [vmem:[#allocation2 + $0x168] sm:$0xff]  ;;  %v100_v26 = vld [vmem:[#allocation2 + $0x130] sm:$0xff]  ;;  %v73_v32 = vld [vmem:[#allocation2 + $0x58] sm:$0xff] }
  0x51   :  { %968 = vmatpush3.bf16.msra.mxu0 %v1209_v25  ;;  %v131_v24 = vpack.c.bf16 %v107_v23, %v101_v22  ;;  %v128_v25 = vpack.c.bf16 %v104_v20, %v98_v18  ;;  %v66_v35 = vld [vmem:[#allocation2 + $0x20] sm:$0xff]  ;;  %v72_v36 = vld [vmem:[#allocation2 + $0x50] sm:$0xff]  ;;  %v91_v43 = vld [vmem:[#allocation2 + $0xe8] sm:$0xff] }
  0x52   :  { %969 = vmatprep.subr.bf16.mxu0 %v1212_v28  ;;  %v1229_v28 = vld [vmem:[#allocation4 + $0x130] sm:$0xff]   ;;  %v114_v39 = vpack.c.bf16 %v72_v36, %v66_v35  ;;  %v78_v41 = vld [vmem:[#allocation2 + $0x80] sm:$0xff]  ;;  %v97_v44 = vld [vmem:[#allocation2 + $0x118] sm:$0xff] }
  0x53   :  { %1008 = vmatpush3.bf16.msra.mxu1 %v1211_v27  ;;  %v106_v27 = vld [vmem:[#allocation2 + $0x160] sm:$0xff]  ;;  %v96_v48 = vld [vmem:[#allocation2 + $0x110] sm:$0xff]  ;;  %v103_v49 = vld [vmem:[#allocation2 + $0x148] sm:$0xff] }
  0x54   :  { %1009 = vmatprep.subr.bf16.mxu1 %v1214_v30  ;;  %v67_v30 = vld [vmem:[#allocation2 + $0x28] sm:$0xff]  ;;  %v130_v31 = vpack.c.bf16 %v106_v27, %v100_v26  ;;  %v109_v50 = vld [vmem:[#allocation2 + $0x178] sm:$0xff]  ;;  %v728_v56 = vld [vmem:[#allocation6] sm:$0xff] }
  0x55   :  { %970 = vmatpush3.bf16.msra.mxu0 %v1213_v29  ;;  %v1230_v29 = vld [vmem:[#allocation4 + $0x178] sm:$0xff]   ;;  %v115_v33 = vpack.c.bf16 %v73_v32, %v67_v30  ;;  %v730_v59 = vld [vmem:[#allocation6 + $0x10] sm:$0xff]  ;;  %v736_v4 = vld [vmem:[#allocation6 + $0x40] sm:$0xff] }
  0x56   :  { %1035 = vmatprep.subr.bf16.mxu0 %v1216_v38  ;;  %v85_v38 = vld [vmem:[#allocation2 + $0xb8] sm:$0xff]  ;;  %v734_v1 = vld [vmem:[#allocation6 + $0x30] sm:$0xff]  ;;  %v741_v11 = vld [vmem:[#allocation6 + $0x68] sm:$0xff] }
  0x57   :  { %1010 = vmatpush3.bf16.msra.mxu1 %v1215_v34  ;;  %v1231_v34 = vld [vmem:[#allocation4 + $0x138] sm:$0xff]   ;;  %v905_v17 = vld [vmem:[%s1433_s2] ss:$0 sm:$0xff] }
  0x58   :  { %558 = vmatmul.mubr.bf16.vlgmr.msra.gmra.mrb[0].mxu0 %v110_v37  ;;  %v79_v37 = vld [vmem:[#allocation2 + $0x88] sm:$0xff]  ;;  %v731_v60 = vld [vmem:[#allocation6 + $0x18] sm:$0xff] }
  0x59   :  { %1036 = vmatpush3.bf16.msra.mxu0 %v1217_v42  ;;  %565 = vmatprep.mubr.bf16.mxu0 %v117_v52  ;;  %v121_v40 = vpack.c.bf16 %v85_v38, %v79_v37  ;;  %v84_v42 = vld [vmem:[#allocation2 + $0xb0] sm:$0xff]  ;;  %v133_v52 = vpack.c.bf16 %v109_v50, %v103_v49  ;;  %v739_v8 = vld [vmem:[#allocation6 + $0x58] sm:$0xff] }
  0x5a   :  { %623 = vmatmul.mubr.bf16.vlgmr.msra.gmra.mrb[0].mxu1 %v112_v45  ;;  %1037 = vmatprep.subr.bf16.mxu0 %v1218_v46  ;;  %v120_v45 = vpack.c.bf16 %v84_v42, %v78_v41  ;;  %v127_v46 = vpack.c.bf16 %v97_v44, %v91_v43 }
  0x5b   :  { %630 = vmatprep.mubr.bf16.mxu1 %v119_v57  ;;  %v729_v57 = vld [vmem:[#allocation6 + $0x8] sm:$0xff] }
  0x5d   :  { %1038 = vmatpush3.bf16.msra.mxu0 %v1219_v47  ;;  %v90_v47 = vld [vmem:[#allocation2 + $0xe0] sm:$0xff] }
  0x5e   :  { %1039 = vmatprep.subr.bf16.mxu0 %v1220_v54  ;;  %v126_v51 = vpack.c.bf16 %v96_v48, %v90_v47  ;;  %v108_v54 = vld [vmem:[#allocation2 + $0x170] sm:$0xff] }
  0x60   :  { %566 = vmatmul.mubr.bf16.gmra.mrb[4].mxu0 %v116_v53  ;;  %v102_v53 = vld [vmem:[#allocation2 + $0x140] sm:$0xff] }
  0x61   :  { %1040 = vmatpush3.bf16.msra.mxu0 %v1221_v58  ;;  %573 = vmatprep.mubr.bf16.mxu0 %v123_v2  ;;  %v132_v55 = vpack.c.bf16 %v108_v54, %v102_v53  ;;  %v1143_v58 = vpack.c.bf16 %v729_v57, %v728_v56  ;;  %v735_v2 = vld [vmem:[#allocation6 + $0x38] sm:$0xff] }
  0x62   :  { %1041 = vmatprep.subr.bf16.mxu0 %v1222_v62  ;;  %631 = vmatmul.mubr.bf16.gmra.mrb[4].mxu1 %v118_v61  ;;  %v1147_v61 = vpack.c.bf16 %v731_v60, %v730_v59  ;;  %v732_v62 = vld [vmem:[#allocation6 + $0x20] sm:$0xff]  ;;  %v1155_v3 = vpack.c.bf16 %v735_v2, %v734_v1 }
  0x63   :  { %638 = vmatprep.mubr.bf16.mxu1 %v125_v9  ;;  %1144 = vmatprep.subr.bf16.mxu1 %v1143_v58 }
  0x64   :  { %1146 = vmatpush3.bf16.msra.mxu1 %v1143_v58 }
  0x65   :  { %1042 = vmatpush3.bf16.msra.mxu0 %v1223_v63  ;;  %1148 = vmatprep.subr.bf16.mxu1 %v1147_v61  ;;  %v733_v63 = vld [vmem:[#allocation6 + $0x28] sm:$0xff] }
  0x66   :  { %1043 = vmatprep.subr.bf16.mxu0 %v1224_v5  ;;  %v1151_v0 = vpack.c.bf16 %v733_v63, %v732_v62  ;;  %v737_v5 = vld [vmem:[#allocation6 + $0x48] sm:$0xff] }
  0x67   :  { %v1159_v6 = vpack.c.bf16 %v737_v5, %v736_v4 }
  0x68   :  { %574 = vmatmul.mubr.bf16.gmra.mrb[8].mxu0 %v122_v7  ;;  %1150 = vmatpush3.bf16.msra.mxu1 %v1147_v61  ;;  %v738_v7 = vld [vmem:[#allocation6 + $0x50] sm:$0xff] }
  0x69   :  { %1044 = vmatpush3.bf16.msra.mxu0 %v1225_v10  ;;  %581 = vmatprep.mubr.bf16.mxu0 %v129_v19  ;;  %v1163_v9 = vpack.c.bf16 %v739_v8, %v738_v7  ;;  %v740_v10 = vld [vmem:[#allocation6 + $0x60] sm:$0xff] }
  0x6a   :  { %1045 = vmatprep.subr.bf16.mxu0 %v1226_v13  ;;  %639 = vmatmul.mubr.bf16.gmra.mrb[8].mxu1 %v124_v14  ;;  %v1167_v12 = vpack.c.bf16 %v741_v11, %v740_v10  ;;  %v742_v13 = vld [vmem:[#allocation6 + $0x70] sm:$0xff]  ;;  %v743_v14 = vld [vmem:[#allocation6 + $0x78] sm:$0xff] }
  0x6b   :  { %646 = vmatprep.mubr.bf16.mxu1 %v131_v24  ;;  %1152 = vmatprep.subr.bf16.mxu1 %v1151_v0 }
  0x6c   :  { %1154 = vmatpush3.bf16.msra.mxu1 %v1151_v0 }
  0x6d   :  { %1046 = vmatpush3.bf16.msra.mxu0 %v1227_v15  ;;  %1156 = vmatprep.subr.bf16.mxu1 %v1155_v3  ;;  %v1171_v15 = vpack.c.bf16 %v743_v14, %v742_v13 }
  0x6e   :  { %1047 = vmatprep.subr.bf16.mxu0 %v1228_v21 }
  0x70   :  { %582 = vmatmul.mubr.bf16.gmra.mrb[12].mxu0 %v128_v25  ;;  %1158 = vmatpush3.bf16.msra.mxu1 %v1155_v3 }
  0x71   :  { %1048 = vmatpush3.bf16.msra.mxu0 %v1229_v28  ;;  %687 = vmatprep.mubr.bf16.mxu0 %v115_v33 }
  0x72   :  { %1049 = vmatprep.subr.bf16.mxu0 %v1230_v29  ;;  %647 = vmatmul.mubr.bf16.gmra.mrb[12].mxu1 %v130_v31 }
  0x73   :  { %1160 = vmatprep.subr.bf16.mxu1 %v1159_v6 }
  0x74   :  { %1162 = vmatpush3.bf16.msra.mxu1 %v1159_v6 }
  0x75   :  { %1050 = vmatpush3.bf16.msra.mxu0 %v1231_v34  ;;  %1164 = vmatprep.subr.bf16.mxu1 %v1163_v9 }
  0x78   :  { %688 = vmatmul.mubr.bf16.vlgmr.msra.gmra.mrb[16].mxu0 %v114_v39  ;;  %1166 = vmatpush3.bf16.msra.mxu1 %v1163_v9 }
  0x79   :  { %695 = vmatprep.mubr.bf16.mxu0 %v121_v40  ;;  %1168 = vmatprep.subr.bf16.mxu1 %v1167_v12 }
  0x7c   :  { %1170 = vmatpush3.bf16.msra.mxu1 %v1167_v12 }
  0x7d   :  { %1172 = vmatprep.subr.bf16.mxu1 %v1171_v15 }
  0x80   :  { %696 = vmatmul.mubr.bf16.gmra.mrb[20].mxu0 %v120_v45  ;;  %1174 = vmatpush3.bf16.msra.mxu1 %v1171_v15 }
  0x81   :  { %703 = vmatprep.mubr.bf16.mxu0 %v127_v46 }
  0x88   :  { %704 = vmatmul.mubr.bf16.gmra.mrb[24].mxu0 %v126_v51 }
  0x89   :  { %711 = vmatprep.mubr.bf16.mxu0 %v133_v52 }
  0x90   :  { %712 = vmatmul.mubr.bf16.gmra.mrb[28].mxu0 %v132_v55 }
 0x12b   :  { %v971_v16 = vpop.f32.mrb[0].mxu0 }
 0x12c   :  { %v972_v18 = vpop.f32.mrb[1].mxu0 }
 0x12d   :  { %v973_v19 = vadd.f32 %v972_v18, %v971_v16  ;;  %v974_v20 = vpop.f32.mrb[2].mxu0  ;;  %v1011_v21 = vpop.f32.mrb[0].mxu1 }
 0x12e   :  { %v975_v22 = vpop.f32.mrb[3].mxu0  ;;  %v1012_v25 = vpop.f32.mrb[1].mxu1 }
 0x12f   :  { %v560_v23 = vadd.f32 %v973_v19, %v905_v17  ;;  %v976_v24 = vadd.f32 %v975_v22, %v974_v20  ;;  %v1013_v26 = vadd.f32 %v1012_v25, %v1011_v21  ;;  %v1014_v27 = vpop.f32.mrb[2].mxu1 }
 0x130   :  { %v1015_v29 = vpop.f32.mrb[3].mxu1 }
 0x131   :  { %v563_v28 = vadd.f32 %v976_v24, %v905_v17  ;;  %v625_v30 = vadd.f32 %v1013_v26, %v560_v23  ;;  %v1016_v31 = vadd.f32 %v1015_v29, %v1014_v27 }
 0x133   :  { %v977_v32 = vpop.f32.mrb[4].mxu0  ;;  %v628_v33 = vadd.f32 %v1016_v31, %v563_v28 }
 0x134   :  { %v978_v34 = vpop.f32.mrb[5].mxu0 }
 0x135   :  { %v979_v35 = vadd.f32 %v978_v34, %v977_v32  ;;  %v980_v36 = vpop.f32.mrb[6].mxu0  ;;  %v1017_v37 = vpop.f32.mrb[4].mxu1 }
 0x136   :  { %v981_v38 = vpop.f32.mrb[7].mxu0  ;;  %v1018_v41 = vpop.f32.mrb[5].mxu1 }
 0x137   :  { %v568_v39 = vadd.f32 %v979_v35, %v905_v17  ;;  %v982_v40 = vadd.f32 %v981_v38, %v980_v36  ;;  %v1019_v42 = vadd.f32 %v1018_v41, %v1017_v37  ;;  %v1020_v43 = vpop.f32.mrb[6].mxu1 }
 0x138   :  { %v1021_v45 = vpop.f32.mrb[7].mxu1 }
 0x139   :  { %v571_v44 = vadd.f32 %v982_v40, %v905_v17  ;;  %v633_v46 = vadd.f32 %v1019_v42, %v568_v39  ;;  %v1022_v47 = vadd.f32 %v1021_v45, %v1020_v43 }
 0x13b   :  { %v983_v48 = vpop.f32.mrb[8].mxu0  ;;  %v636_v49 = vadd.f32 %v1022_v47, %v571_v44 }
 0x13c   :  { %v984_v50 = vpop.f32.mrb[9].mxu0 }
 0x13d   :  { %v985_v51 = vadd.f32 %v984_v50, %v983_v48  ;;  %v986_v52 = vpop.f32.mrb[10].mxu0  ;;  %v1023_v53 = vpop.f32.mrb[8].mxu1 }
 0x13e   :  { %v987_v54 = vpop.f32.mrb[11].mxu0  ;;  %v1024_v57 = vpop.f32.mrb[9].mxu1 }
 0x13f   :  { %v576_v55 = vadd.f32 %v985_v51, %v905_v17  ;;  %v988_v56 = vadd.f32 %v987_v54, %v986_v52  ;;  %v1025_v58 = vadd.f32 %v1024_v57, %v1023_v53  ;;  %v1026_v59 = vpop.f32.mrb[10].mxu1  ;;  %v954_v57 = vld [vmem:[%s1435_s4] ss:$0 sm:$0xff] }
 0x140   :  { %v1027_v61 = vpop.f32.mrb[11].mxu1 }
 0x141   :  { %v579_v60 = vadd.f32 %v988_v56, %v905_v17  ;;  %v641_v62 = vadd.f32 %v1025_v58, %v576_v55  ;;  %v1028_v63 = vadd.f32 %v1027_v61, %v1026_v59 }
 0x143   :  { %v989_v0 = vpop.f32.mrb[12].mxu0  ;;  %v644_v1 = vadd.f32 %v1028_v63, %v579_v60 }
 0x144   :  { %v990_v2 = vpop.f32.mrb[13].mxu0 }
 0x145   :  { %v991_v3 = vadd.f32 %v990_v2, %v989_v0  ;;  %v992_v4 = vpop.f32.mrb[14].mxu0  ;;  %v1029_v5 = vpop.f32.mrb[12].mxu1  ;;  %v856_v2 = vlaneseq }
 0x146   :  { %v993_v6 = vpop.f32.mrb[15].mxu0  ;;  %v1030_v9 = vpop.f32.mrb[13].mxu1 }
 0x147   :  { %v584_v7 = vadd.f32 %v991_v3, %v905_v17  ;;  %v994_v8 = vadd.f32 %v993_v6, %v992_v4  ;;  %v1031_v10 = vadd.f32 %v1030_v9, %v1029_v5  ;;  %v1032_v11 = vpop.f32.mrb[14].mxu1 }
 0x148   :  { %v1033_v13 = vpop.f32.mrb[15].mxu1 }
 0x149   :  { %v587_v12 = vadd.f32 %v994_v8, %v905_v17  ;;  %v649_v14 = vadd.f32 %v1031_v10, %v584_v7  ;;  %v1034_v15 = vadd.f32 %v1033_v13, %v1032_v11  ;;  %v857_v7 = vand.u32 127, %v856_v2 }
 0x14b   :  { %v1051_v16 = vpop.f32.mrb[16].mxu0  ;;  %v652_v18 = vadd.f32 %v1034_v15, %v587_v12  ;;  %vm858_vm0 = vcmp.lt.s32.totalorder %v857_v7, 10 }
 0x14c   :  { %v1052_v19 = vpop.f32.mrb[17].mxu0 }
 0x14d   :  { %v1053_v20 = vadd.f32 %v1052_v19, %v1051_v16  ;;  %v1054_v21 = vpop.f32.mrb[18].mxu0 }
 0x14e   :  { %v1055_v22 = vpop.f32.mrb[19].mxu0 }
 0x14f   :  { %v690_v23 = vadd.f32 %v1053_v20, %v625_v30  ;;  %v1056_v24 = vadd.f32 %v1055_v22, %v1054_v21 }
 0x151   :  { %v720_v25 = vmax.f32 %v690_v23, 0.0  ;;  %v693_v26 = vadd.f32 %v1056_v24, %v628_v33 }
 0x153   :  { %v721_v27 = vmax.f32 %v693_v26, 0.0  ;;  %v1057_v28 = vpop.f32.mrb[20].mxu0  ;;  %1131 = vmatprep.mubr.f32.mxu1 %v720_v25 }
 0x154   :  { %v1058_v29 = vpop.f32.mrb[21].mxu0 }
 0x155   :  { %v1059_v31 = vadd.f32 %v1058_v29, %v1057_v28  ;;  %v1060_v32 = vpop.f32.mrb[22].mxu0  ;;  %1132 = vmatmul.mubr.f32.vlgmr.msra.gmra.mrb[16].mxu1 %v721_v27 }
 0x156   :  { %v1061_v17 = vpop.f32.mrb[23].mxu0 }
 0x157   :  { %v698_v34 = vadd.f32 %v1059_v31, %v633_v46  ;;  %v1062_v35 = vadd.f32 %v1061_v17, %v1060_v32 }
 0x159   :  { %v722_v36 = vmax.f32 %v698_v34, 0.0  ;;  %v701_v37 = vadd.f32 %v1062_v35, %v636_v49 }
 0x15b   :  { %v723_v38 = vmax.f32 %v701_v37, 0.0  ;;  %v1063_v39 = vpop.f32.mrb[24].mxu0  ;;  %1134 = vmatprep.mubr.f32.mxu1 %v722_v36 }
 0x15c   :  { %v1064_v40 = vpop.f32.mrb[25].mxu0 }
 0x15d   :  { %v1065_v30 = vadd.f32 %v1064_v40, %v1063_v39  ;;  %v1066_v41 = vpop.f32.mrb[26].mxu0  ;;  %1135 = vmatmul.mubr.f32.gmra.mrb[18].mxu1 %v723_v38 }
 0x15e   :  { %v1067_v33 = vpop.f32.mrb[27].mxu0 }
 0x15f   :  { %v706_v42 = vadd.f32 %v1065_v30, %v641_v62  ;;  %v1068_v43 = vadd.f32 %v1067_v33, %v1066_v41 }
 0x161   :  { %v724_v44 = vmax.f32 %v706_v42, 0.0  ;;  %v709_v45 = vadd.f32 %v1068_v43, %v644_v1 }
 0x163   :  { %v725_v47 = vmax.f32 %v709_v45, 0.0  ;;  %v1069_v48 = vpop.f32.mrb[28].mxu0  ;;  %1137 = vmatprep.mubr.f32.mxu1 %v724_v44 }
 0x164   :  { %v1070_v50 = vpop.f32.mrb[29].mxu0 }
 0x165   :  { %v1071_v46 = vadd.f32 %v1070_v50, %v1069_v48  ;;  %v1072_v51 = vpop.f32.mrb[30].mxu0  ;;  %1138 = vmatmul.mubr.f32.gmra.mrb[20].mxu1 %v725_v47 }
 0x166   :  { %v1073_v49 = vpop.f32.mrb[31].mxu0 }
 0x167   :  { %v714_v52 = vadd.f32 %v1071_v46, %v649_v14  ;;  %v1074_v53 = vadd.f32 %v1073_v49, %v1072_v51 }
 0x169   :  { %v726_v54 = vmax.f32 %v714_v52, 0.0  ;;  %v717_v55 = vadd.f32 %v1074_v53, %v652_v18 }
 0x16b   :  { %v727_v56 = vmax.f32 %v717_v55, 0.0  ;;  %1140 = vmatprep.mubr.f32.mxu1 %v726_v54 }
 0x16d   :  { %1141 = vmatmul.mubr.f32.gmra.mrb[22].mxu1 %v727_v56 }
 0x228   :  { %v1133_v58 = vpop.f32.mrb[16].mxu1 }
 0x229   :  { %v823_v59 = vadd.f32 %v1133_v58, %v954_v57  ;;  %v817_v60 = vpop.f32.mrb[17].mxu1 }
 0x22a   :  { %v818_v61 = vadd.f32 %v954_v57, %v817_v60 }
 0x22b   :  { %v860_v62 = vmul.f32 0.5, %v823_v59 }
 0x22c   :  { %v859_v63 = vmul.f32 0.5, %v818_v61 }
 0x22d   :  { %v869_v0 = vmul.f32 1.442695, %v860_v62 }
 0x22e   :  { %v867_v1 = vmul.f32 1.442695, %v859_v63 }
 0x22f   :  { %1232 = vpow2.f32 %v869_v0 }
 0x230   :  { %1234 = vpow2.f32 %v867_v1  ;;  %v1136_v3 = vpop.f32.mrb[18].mxu1 }
 0x231   :  { %v833_v4 = vadd.f32 %v1136_v3, %v954_v57  ;;  %v827_v5 = vpop.f32.mrb[19].mxu1 }
 0x232   :  { %v828_v6 = vadd.f32 %v954_v57, %v827_v5 }
 0x233   :  { %v862_v8 = vmul.f32 0.5, %v833_v4 }
 0x234   :  { %v861_v9 = vmul.f32 0.5, %v828_v6 }
 0x235   :  { %v873_v10 = vmul.f32 1.442695, %v862_v8 }
 0x236   :  { %v871_v11 = vmul.f32 1.442695, %v861_v9 }
 0x237   :  { %1236 = vpow2.f32 %v873_v10 }
 0x238   :  { %1238 = vpow2.f32 %v871_v11  ;;  %v1139_v12 = vpop.f32.mrb[20].mxu1 }
 0x239   :  { %v1233_v13 = vpop.eup %1232  ;;  %v843_v14 = vadd.f32 %v1139_v12, %v954_v57  ;;  %v837_v15 = vpop.f32.mrb[21].mxu1 }
 0x23a   :  { %v1235_v16 = vpop.eup %1234  ;;  %v884_v18 = vsel %vm858_vm0, %v823_v59, %v1233_v13  ;;  %v838_v19 = vadd.f32 %v954_v57, %v837_v15 }
 0x23b   :  { %892 = vst [vmem:[%s1436_s5 + $0x8] sm:$0xff] %v884_v18  ;;  %v883_v20 = vsel %vm858_vm0, %v818_v61, %v1235_v16  ;;  %v864_v21 = vmul.f32 0.5, %v843_v14 }
 0x23c   :  { %891 = vst [vmem:[%s1436_s5] sm:$0xff] %v883_v20  ;;  %v863_v22 = vmul.f32 0.5, %v838_v19 }
 0x23d   :  { %v877_v23 = vmul.f32 1.442695, %v864_v21 }
 0x23e   :  { %v875_v24 = vmul.f32 1.442695, %v863_v22 }
 0x23f   :  { %1240 = vpow2.f32 %v877_v23 }
 0x240   :  { %1242 = vpow2.f32 %v875_v24  ;;  %v1142_v25 = vpop.f32.mrb[22].mxu1 }
 0x241   :  { %v1237_v26 = vpop.eup %1236  ;;  %v853_v27 = vadd.f32 %v1142_v25, %v954_v57  ;;  %v847_v28 = vpop.f32.mrb[23].mxu1 }
 0x242   :  { %v1239_v29 = vpop.eup %1238  ;;  %v886_v31 = vsel %vm858_vm0, %v833_v4, %v1237_v26  ;;  %v848_v32 = vadd.f32 %v954_v57, %v847_v28 }
 0x243   :  { %894 = vst [vmem:[%s1436_s5 + $0x18] sm:$0xff] %v886_v31  ;;  %v885_v17 = vsel %vm858_vm0, %v828_v6, %v1239_v29  ;;  %v866_v34 = vmul.f32 0.5, %v853_v27 }
 0x244   :  { %893 = vst [vmem:[%s1436_s5 + $0x10] sm:$0xff] %v885_v17  ;;  %v865_v35 = vmul.f32 0.5, %v848_v32 }
 0x245   :  { %v881_v36 = vmul.f32 1.442695, %v866_v34 }
 0x246   :  { %v879_v37 = vmul.f32 1.442695, %v865_v35 }
 0x247   :  { %1244 = vpow2.f32 %v881_v36 }
 0x248   :  { %1246 = vpow2.f32 %v879_v37 }
 0x249   :  { %v1241_v38 = vpop.eup %1240 }
 0x24a   :  { %v1243_v39 = vpop.eup %1242  ;;  %v888_v40 = vsel %vm858_vm0, %v843_v14, %v1241_v38 }
 0x24b   :  { %896 = vst [vmem:[%s1436_s5 + $0x28] sm:$0xff] %v888_v40  ;;  %v887_v30 = vsel %vm858_vm0, %v838_v19, %v1243_v39 }
 0x24c   :  { %895 = vst [vmem:[%s1436_s5 + $0x20] sm:$0xff] %v887_v30 }
 0x251   :  { %v1245_v41 = vpop.eup %1244 }
 0x252   :  { %v1247_v33 = vpop.eup %1246  ;;  %v890_v42 = vsel %vm858_vm0, %v853_v27, %v1245_v41 }
 0x253   :  { %898 = vst [vmem:[%s1436_s5 + $0x38] sm:$0xff] %v890_v42  ;;  %v889_v43 = vsel %vm858_vm0, %v848_v32, %v1247_v33 }
 0x254   :  { %897 = vst [vmem:[%s1436_s5 + $0x30] sm:$0xff] %v889_v43 }
 0x255   :  { %903 = vsyncpa [#allocation3], 1 }
 0x256   :  { %904 = vsyncpa [#allocation5], 1 }

</bundles_post_ra>
